<compile_context>
chip_gen: v7x
topology: tpu7x:2x2x1
jax: 0.10.0
libtpu: 0.0.40
codegen_flags: <defaults>
</compile_context>

<pallas_src>
import math
import functools

import jax
import jax.numpy as jnp
from jax import lax
from jax.experimental import pallas as pl
from jax.experimental.pallas import tpu as pltpu


_LOG_10000 = math.log(10000.0)


# ---------------------------------------------------------------------------
# In-kernel sinusoidal table evaluation
# ---------------------------------------------------------------------------
def _pe_from_indices(pos_i32, col_i32, d_model):
    """pe[pos, col] (f32) for int32 index arrays, matching the torch formula."""
    parity = col_i32 & 1                                   # 0 -> sin lane, 1 -> cos lane
    two_j = (col_i32 - parity).astype(jnp.float32)         # 2 * (col // 2)
    pos = pos_i32.astype(jnp.float32)
    angle = pos * jnp.exp(two_j * (-_LOG_10000 / d_model)) # EUP exp
    return jnp.where(parity == 0, jnp.sin(angle), jnp.cos(angle))


def _pe_add_kernel_2d(x_ref, o_ref, *, tile_rows, d_model):
    """x tile is [tile_rows, d_model]; rows map directly to positions."""
    r0 = pl.program_id(0) * tile_rows
    rows, cols = x_ref.shape
    pos = r0 + lax.broadcasted_iota(jnp.int32, (rows, cols), 0)
    col = lax.broadcasted_iota(jnp.int32, (rows, cols), 1)
    pe = _pe_from_indices(pos, col, d_model)
    o_ref[...] = (x_ref[...].astype(jnp.float32) + pe).astype(o_ref.dtype)


def _pe_add_kernel_flat(x_ref, o_ref, *, tile_rows, d_model):
    """Lane-dense view: x tile is [tile_rows, 128] of the flattened [S*D] array.

    d_model is a power of two < 128, so position/column are recovered from the
    flat element index with a shift and a mask (pure VPU bit ops).
    """
    shift = d_model.bit_length() - 1
    r0 = pl.program_id(0) * tile_rows
    rows, lanes = x_ref.shape
    flat = (r0 + lax.broadcasted_iota(jnp.int32, (rows, lanes), 0)) * lanes \
        + lax.broadcasted_iota(jnp.int32, (rows, lanes), 1)
    pos = flat >> shift
    col = flat & (d_model - 1)
    pe = _pe_from_indices(pos, col, d_model)
    o_ref[...] = (x_ref[...].astype(jnp.float32) + pe).astype(o_ref.dtype)


# ---------------------------------------------------------------------------
# Wrapper
# ---------------------------------------------------------------------------
def _choose_tile_rows(n_rows, row_elems, max_rows):
    """Largest tile (<= ~2 MiB f32 per buffer) respecting the (8, 128) rule."""
    budget = max(8, (512 * 1024) // max(row_elems, 1))  # rows per ~2 MiB f32 tile
    t = min(n_rows, max_rows, budget)
    if t < n_rows:                                      # partial: keep multiple of 8
        t = max(8, (t // 8) * 8)
    return t


def positional_encoding_forward(x: jnp.ndarray, *, max_len: int = 200,
                                donate: bool = False) -> jnp.ndarray:
    """x: [seq_len, d_model]. Returns x + sinusoidal PE[:seq_len] (computed in-kernel)."""
    seq_len, d_model = x.shape
    if d_model % 2 != 0:
        raise ValueError("d_model must be even (matches the PyTorch module).")
    if seq_len > max_len:
        raise ValueError(f"seq_len={seq_len} exceeds max_len={max_len}")

    compiler_params = pltpu.CompilerParams(dimension_semantics=("parallel",))
    io_alias = {0: 0} if donate else {}

    lane_dense = (
        d_model < 128
        and (d_model & (d_model - 1)) == 0        # power of two -> shift/mask index math
        and (seq_len * d_model) % 128 == 0
    )

    if lane_dense:
        # View the contiguous [S, D] array as [S*D/128, 128]: full-lane loads/stores.
        n_rows = (seq_len * d_model) // 128
        tile_rows = _choose_tile_rows(n_rows, 128, max_rows=1024)
        kernel = functools.partial(_pe_add_kernel_flat,
                                   tile_rows=tile_rows, d_model=d_model)
        out = pl.pallas_call(
            kernel,
            out_shape=jax.ShapeDtypeStruct((n_rows, 128), x.dtype),
            grid=(pl.cdiv(n_rows, tile_rows),),
            in_specs=[pl.BlockSpec((tile_rows, 128), lambda i: (i, 0))],
            out_specs=pl.BlockSpec((tile_rows, 128), lambda i: (i, 0)),
            compiler_params=compiler_params,
            input_output_aliases=io_alias,
        )(x.reshape(n_rows, 128))
        return out.reshape(seq_len, d_model)

    # General path: tile over the sequence axis, keep full d_model in lanes.
    tile_rows = _choose_tile_rows(seq_len, d_model, max_rows=512)
    kernel = functools.partial(_pe_add_kernel_2d,
                               tile_rows=tile_rows, d_model=d_model)
    return pl.pallas_call(
        kernel,
        out_shape=jax.ShapeDtypeStruct((seq_len, d_model), x.dtype),
        grid=(pl.cdiv(seq_len, tile_rows),),
        in_specs=[pl.BlockSpec((tile_rows, d_model), lambda i: (i, 0))],
        out_specs=pl.BlockSpec((tile_rows, d_model), lambda i: (i, 0)),
        compiler_params=compiler_params,
        input_output_aliases=io_alias,
    )(x)


# ---------------------------------------------------------------------------
# Reference (verification only — not on the hot path)
# ---------------------------------------------------------------------------
def _build_pe_reference(d_model: int, max_len: int = 200) -> jnp.ndarray:
    position = jnp.arange(max_len, dtype=jnp.float32)[:, None]
    div_term = jnp.exp(
        jnp.arange(0, d_model, 2, dtype=jnp.float32) * (-_LOG_10000 / d_model))
    angles = position * div_term
    pe = jnp.zeros((max_len, d_model), dtype=jnp.float32)
    pe = pe.at[:, 0::2].set(jnp.sin(angles))
    pe = pe.at[:, 1::2].set(jnp.cos(angles))
    return pe


if __name__ == "__main__":
    max_len = 200

    # Module-consistent small shapes: seq=8, hidden=32 (lane-dense flat path).
    d_model, seq_len = 32, 8
    key = jax.random.PRNGKey(0)
    k0, k1 = jax.random.split(key)
    x = jax.random.normal(k0, (seq_len, d_model), dtype=jnp.float32)

    out = jax.block_until_ready(positional_encoding_forward(x, max_len=max_len))
    ref = x + _build_pe_reference(d_model, max_len)[:seq_len]
    assert out.shape == (seq_len, d_model)
    assert jnp.allclose(out, ref, atol=1e-4, rtol=1e-4), "mismatch vs reference (flat path)"

    # Also exercise the general 2-D path (non-power-of-two d_model).
    d2, s2 = 40, 12
    x2 = jax.random.normal(k1, (s2, d2), dtype=jnp.float32)
    out2 = jax.block_until_ready(positional_encoding_forward(x2, max_len=max_len))
    ref2 = x2 + _build_pe_reference(d2, max_len)[:s2]
    assert jnp.allclose(out2, ref2, atol=1e-4, rtol=1e-4), "mismatch vs reference (2D path)"

    print("KERNEL_OK")
</pallas_src>

<mosaic_0001>
module attributes {stable_mosaic.version = 11 : i64} {
  func.func @_pe_add_kernel_flat(%arg0: i32, %arg1: memref<2x128xf32, #tpu.memory_space<vmem>>, %arg2: memref<2x128xf32, #tpu.memory_space<vmem>>) attributes {dimension_semantics = [#tpu.dimension_semantics<parallel>], iteration_bounds = array<i64: 1>, scalar_prefetch = 0 : i64, scratch_operands = 0 : i64, tpu.core_type = #tpu.core_type<tc>, window_params = [{transform_indices = @transform_0, window_bounds = array<i64: 2, 128>}, {transform_indices = @transform_1, window_bounds = array<i64: 2, 128>}]} {
    %c2_i32 = arith.constant 2 : i32
    %0 = arith.muli %arg0, %c2_i32 : i32
    %1 = tpu.iota {dimensions = array<i32: 0>} : vector<2x128xi32>
    %2 = vector.broadcast %0 : i32 to vector<2x128xi32>
    %3 = arith.addi %2, %1 : vector<2x128xi32>
    %c128_i32 = arith.constant 128 : i32
    %4 = vector.broadcast %c128_i32 : i32 to vector<2x128xi32>
    %5 = arith.muli %3, %4 : vector<2x128xi32>
    %6 = tpu.iota {dimensions = array<i32: 1>} : vector<2x128xi32>
    %7 = arith.addi %5, %6 : vector<2x128xi32>
    %c5_i32 = arith.constant 5 : i32
    %8 = vector.broadcast %c5_i32 : i32 to vector<2x128xi32>
    %9 = arith.shrsi %7, %8 : vector<2x128xi32>
    %c31_i32 = arith.constant 31 : i32
    %10 = vector.broadcast %c31_i32 : i32 to vector<2x128xi32>
    %11 = arith.andi %7, %10 : vector<2x128xi32>
    %c1_i32 = arith.constant 1 : i32
    %12 = vector.broadcast %c1_i32 : i32 to vector<2x128xi32>
    %13 = arith.andi %11, %12 : vector<2x128xi32>
    %14 = arith.subi %11, %13 : vector<2x128xi32>
    %15 = arith.sitofp %14 : vector<2x128xi32> to vector<2x128xf32>
    %16 = arith.sitofp %9 : vector<2x128xi32> to vector<2x128xf32>
    %cst = arith.constant -0.287823141 : f32
    %17 = vector.broadcast %cst : f32 to vector<2x128xf32>
    %18 = arith.mulf %15, %17 : vector<2x128xf32>
    %19 = math.exp %18 : vector<2x128xf32>
    %20 = arith.mulf %16, %19 : vector<2x128xf32>
    %c0_i32 = arith.constant 0 : i32
    %21 = vector.broadcast %c0_i32 : i32 to vector<2x128xi32>
    %22 = arith.cmpi eq, %13, %21 : vector<2x128xi32>
    %23 = math.sin %20 : vector<2x128xf32>
    %24 = math.cos %20 : vector<2x128xf32>
    %25 = arith.select %22, %23, %24 : vector<2x128xi1>, vector<2x128xf32>
    %c0 = arith.constant 0 : index
    %c0_0 = arith.constant 0 : index
    %26 = vector.load %arg1[%c0, %c0_0] : memref<2x128xf32, #tpu.memory_space<vmem>>, vector<2x128xf32>
    %27 = arith.addf %26, %25 : vector<2x128xf32>
    %c0_1 = arith.constant 0 : index
    %c0_2 = arith.constant 0 : index
    %28 = vector.load %arg2[%c0_1, %c0_2] : memref<2x128xf32, #tpu.memory_space<vmem>>, vector<2x128xf32>
    tpu.vector_store %arg2[%c0_1, %c0_2], %27 {strides = array<i32>} : memref<2x128xf32, #tpu.memory_space<vmem>>, vector<2x128xf32>,
    return
  }
  func.func @transform_0(%arg0: i32) -> (i32, i32) {
    %c0_i32 = arith.constant 0 : i32
    %c0_i32_0 = arith.constant 0 : i32
    return %arg0, %c0_i32 : i32, i32
  }
  func.func @transform_1(%arg0: i32) -> (i32, i32) {
    %c0_i32 = arith.constant 0 : i32
    %c0_i32_0 = arith.constant 0 : i32
    return %arg0, %c0_i32 : i32, i32
  }
}

</mosaic_0001>

<bundles_post_ra>
// kernel: tpu_custom_call.1
= control target key start
LH: loop header
LB: loop body
LE: loop exit
PB: predicated region body
PF: predicated region fallthrough
CT: control target
= control target key end

     0   :  { %6 = vsyncpa [#allocation3], 0  ;;  %s408_s0 = inlined_call_operand.hbm [shape: f32[2,128], index: 0, kind: input, shape index: {}]   ;;  %s409_s1 = inlined_call_operand.hbm [shape: f32[2,128], index: 1, kind: output, shape index: {}]  }
   0x1   :  { %7 = vsyncpa [#allocation4], 0  ;;  %s341_s6 = smov [#allocation2]   ;;  %s293_s10 = scalar_lea.hbm %s408_s0, 32 }
   0x2   :  { %s14_s7 = sshll.u32 %s341_s6, 4  ;;  %p294_p0 = scmp.ne.s32.totalorder %s408_s0, %s293_s10  ;;  %s15_s7 = int_to_ptr.vmem [resolvable:$true] %s14_s7 }
   0x3   :  { %p297_p1 = scmp.lt.u32.totalorder %s293_s10, %s408_s0 }
   0x5   :  { %p299_p2 = pnand %p297_p1, %p294_p0 }
   0x7   :  { %302 = shalt.err (!%p299_p2)
}
   0x8   :  { %s303_s15 = scalar_lea.vmem %s15_s7, 32  ;;  %p308_p4 = scmp.lt.s32.totalorder %s15_s7, %s15_s7 }
   0x9   :  { %p304_p3 = scmp.ne.s32.totalorder %s15_s7, %s303_s15  ;;  %p309_p5 = scmp.lt.s32.totalorder %s303_s15, %s303_s15 }
   0xb   :  { %p310_p6 = por %p309_p5, %p308_p4 }
   0xd   :  { %p311_p7 = pnand %p310_p6, %p304_p3 }
   0xf   :  { %314 = shalt.err (!%p311_p7)
}
  0x10   :  { %17 = dma.hbm_to_vmem [thread:$0]  %s408_s0, 32, %s15_s7, [#allocation3]  }
  0x11   :  { %337 = dma.done.wait [#allocation3], 32  }
  0x12   :  { %338 = vsyncadd [#allocation3], 4294967264  ;;  %v22_v0 = vlaneseq  ;;  %v342_v26 = vmov 683565275   ;;  %v343_v28 = vmov 2475754826  }
  0x13   :  { %v344_v30 = vmov 2131351028   ;;  %v345_v32 = vmov 2102212464   ;;  %v346_v34 = vmov 920167782  }
  0x14   :  { %v23_v1 = vshrl.u32 %v22_v0, 7  ;;  %v28_v2 = vand.u32 127, %v22_v0  ;;  %v347_v41 = vmov 1326507024   ;;  %s348_s0 = smov [#allocation5]  }
  0x15   :  { %s258_s18 = sshll.u32 %s348_s0, 4  ;;  %s259_s18 = int_to_ptr.vmem [resolvable:$true] %s258_s18 }
  0x16   :  { %v26_v3 = vmul.u32 128, %v23_v1  ;;  %s315_s19 = scalar_lea.vmem %s259_s18, 32  ;;  %p320_p9 = scmp.lt.s32.totalorder %s259_s18, %s259_s18 }
  0x17   :  { %p316_p8 = scmp.ne.s32.totalorder %s259_s18, %s315_s19  ;;  %p321_p10 = scmp.lt.s32.totalorder %s315_s19, %s315_s19 }
  0x18   :  { %v29_v4 = vadd.s32 %v28_v2, %v26_v3 }
  0x19   :  { %p322_p11 = por %p321_p10, %p320_p9 }
  0x1a   :  { %v31_v5 = vand.u32 31, %v29_v4  ;;  %v30_v11 = vshra.s32 %v29_v4, 5 }
  0x1b   :  { %p323_p12 = pnand %p322_p11, %p316_p8 }
  0x1c   :  { %v371_v6 = vand.u32 1, %v31_v5  ;;  %v35_v12 = vcvt.s32.f32 %v30_v11 }
  0x1e   :  { %v33_v7 = vsub.s32 %v31_v5, %v371_v6 }
  0x20   :  { %v34_v8 = vcvt.s32.f32 %v33_v7 }
  0x22   :  { %v36_v9 = vmul.f32 -0.28782314, %v34_v8 }
  0x24   :  { %v37_v10 = vmul.f32 1.442695, %v36_v9 }
  0x26   :  { %287 = vpow2.f32 %v37_v10 }
  0x30   :  { %v288_v13 = vpop.eup %287 }
  0x31   :  { %v374_v14 = vmul.f32 %v288_v13, %v35_v12 }
  0x33   :  { %v44_v15 = vand.u32 2139095040, %v374_v14  ;;  %v41_v17 = vand.u32 2147483647, %v374_v14  ;;  %vm43_vm7 = vcmp.lt.s32.totalorder %v374_v14, 0  ;;  %vm133_vm15 = vweird.f32 %v374_v14 }
  0x35   :  { %v45_v16 = vshrl.u32 %v44_v15, 23  ;;  %v48_v20 = vand.u32 8388607, %v41_v17  ;;  %vm42_vm8 = vcmp.le.f32.partialorder %v41_v17, 0.7853982 }
  0x37   :  { %v267_v18 = vadd.s32 4294967169, %v45_v16  ;;  %v49_v23 = vor.u32 8388608, %v48_v20 }
  0x39   :  { %v51_v19 = vadd.s32 1, %v267_v18  ;;  %v89_v43 = vshll.u32 %v49_v23, 8 }
  0x3b   :  { %vm52_vm0 = vcmp.gt.s32.totalorder %v51_v19, 0 }
  0x3c   :  { %v53_v21 = vsel %vm52_vm0, %v51_v19, 0  ;;  %vm40_vm0 = vcmp.eq.s32.totalorder %v371_v6, 0 }
  0x3d   :  { %v55_v22 = vand.u32 31, %v53_v21  ;;  %v54_v24 = vshrl.u32 %v53_v21, 5 }
  0x3f   :  { %v56_v25 = vsub.s32 32, %v55_v22  ;;  %v58_v27 = vshll.u32 %v342_v26, %v55_v22  ;;  %v61_v29 = vshll.u32 %v343_v28, %v55_v22  ;;  %v64_v31 = vshll.u32 %v344_v30, %v55_v22 }
  0x40   :  { %v67_v33 = vshll.u32 %v345_v32, %v55_v22  ;;  %v70_v35 = vshll.u32 %v346_v34, %v55_v22  ;;  %vm73_vm1 = vcmp.lt.s32.totalorder %v54_v24, 1  ;;  %vm76_vm2 = vcmp.lt.s32.totalorder %v54_v24, 4 }
  0x41   :  { %v57_v36 = vshrl.u32 %v342_v26, %v56_v25  ;;  %v59_v37 = vshrl.u32 %v343_v28, %v56_v25  ;;  %v62_v38 = vshrl.u32 %v344_v30, %v56_v25  ;;  %v65_v39 = vshrl.u32 %v345_v32, %v56_v25 }
  0x42   :  { %v68_v40 = vshrl.u32 %v346_v34, %v56_v25  ;;  %v71_v42 = vshrl.u32 %v347_v41, %v56_v25  ;;  %vm74_vm3 = vcmp.lt.s32.totalorder %v54_v24, 2  ;;  %vm75_vm4 = vcmp.lt.s32.totalorder %v54_v24, 3 }
  0x43   :  { %v60_v44 = vor.u32 %v59_v37, %v58_v27  ;;  %v63_v45 = vor.u32 %v62_v38, %v61_v29  ;;  %v66_v46 = vor.u32 %v65_v39, %v64_v31 }
  0x44   :  { %v69_v47 = vor.u32 %v68_v40, %v67_v33  ;;  %v72_v48 = vor.u32 %v71_v42, %v70_v35 }
  0x45   :  { %v77_v49 = vsel %vm73_vm1, %v57_v36, %v60_v44  ;;  %v78_v50 = vsel %vm76_vm2, %v66_v46, 2102212464  ;;  %v81_v51 = vsel %vm73_vm1, %v60_v44, %v63_v45  ;;  %v85_v52 = vsel %vm73_vm1, %v63_v45, %v66_v46 }
  0x46   :  { %v79_v53 = vsel %vm75_vm4, %v63_v45, %v78_v50  ;;  %v82_v54 = vsel %vm76_vm2, %v69_v47, 920167782  ;;  %v86_v55 = vsel %vm76_vm2, %v72_v48, 1326507024 }
  0x47   :  { %v83_v56 = vsel %vm75_vm4, %v66_v46, %v82_v54  ;;  %v87_v57 = vsel %vm75_vm4, %v69_v47, %v86_v55  ;;  %v80_v58 = vsel %vm74_vm3, %v77_v49, %v79_v53  ;;  %v249_v47 = vld [vmem:[#allocation2] sm:$0x3] }
  0x48   :  { %v84_v59 = vsel %vm74_vm3, %v81_v51, %v83_v56  ;;  %v88_v60 = vsel %vm74_vm3, %v85_v52, %v87_v57  ;;  %v96_v1 = vmul.u32 %v89_v43, %v80_v58 }
  0x49   :  { %v380_v61 = vmul.u32.u64.low %v89_v43, %v88_v60  ;;  %v381_v62 = vmul.u32.u64.high %v89_v43, %v88_v60, %v380_v61  ;;  %v383_v63 = vmul.u32.u64.low %v89_v43, %v84_v59  ;;  %v384_v0 = vmul.u32.u64.high %v89_v43, %v84_v59, %v383_v63 }
  0x4b   :  { %vm98_vm5 = vc.u32 %v381_v62, %v383_v63  ;;  %v99_v2 = vadd.s32 1, %v384_v0  ;;  %v97_v15 = vadd.s32 %v383_v63, %v381_v62 }
  0x4d   :  { %v100_v3 = vsel %vm98_vm5, %v99_v2, %v384_v0 }
  0x4e   :  { %v101_v4 = vadd.s32 %v100_v3, %v96_v1 }
  0x50   :  { %v102_v5 = vadd.s32 536870912, %v101_v4 }
  0x52   :  { %v103_v7 = vshrl.u32 %v102_v5, 30 }
  0x54   :  { %v104_v8 = vshll.u32 %v103_v7, 30  ;;  %v127_v28 = vsub.s32 4, %v103_v7 }
  0x56   :  { %v105_v9 = vsub.s32 %v101_v4, %v104_v8  ;;  %v128_v31 = vsel %vm43_vm7, %v127_v28, %v103_v7 }
  0x57   :  { %v130_v34 = vsel %vm42_vm8, 0, %v128_v31 }
  0x58   :  { %v107_v10 = vsub.s32 0, %v105_v9  ;;  %v134_v35 = vadd.s32 3, %v130_v34  ;;  %v238_v37 = vand.u32 3, %v130_v34 }
  0x5a   :  { %v268_v11 = vmin.u32 %v107_v10, %v105_v9  ;;  %v135_v36 = vand.u32 3, %v134_v35  ;;  %vm243_vm10 = vcmp.eq.s32.totalorder %v238_v37, 2  ;;  %vm240_vm12 = vcmp.eq.s32.totalorder %v238_v37, 0 }
  0x5b   :  { %vm239_vm14 = vcmp.lt.s32.totalorder %v238_v37, 2 }
  0x5c   :  { %v109_v12 = vclz %v268_v11  ;;  %vm140_vm9 = vcmp.eq.s32.totalorder %v135_v36, 2  ;;  %vm137_vm11 = vcmp.eq.s32.totalorder %v135_v36, 0  ;;  %vm136_vm13 = vcmp.lt.s32.totalorder %v135_v36, 2 }
  0x5e   :  { %v269_v13 = vadd.s32 4294967294, %v109_v12 }
  0x60   :  { %vm270_vm6 = vcmp.lt.s32.totalorder %v269_v13, 0 }
  0x61   :  { %v112_v16 = vsel %vm270_vm6, 0, %v269_v13 }
  0x62   :  { %v113_v18 = vsub.s32 32, %v112_v16  ;;  %v114_v19 = vshll.u32 %v105_v9, %v112_v16  ;;  %v117_v20 = vsub.s32 4294967266, %v112_v16 }
  0x64   :  { %v115_v21 = vshrl.u32 %v97_v15, %v113_v18  ;;  %v118_v22 = vadd.s32 127, %v117_v20 }
  0x66   :  { %v116_v23 = vor.u32 %v115_v21, %v114_v19  ;;  %v119_v24 = vshll.u32 %v118_v22, 23 }
  0x68   :  { %v120_v25 = vor.u32 4788187, %v119_v24  ;;  %v123_v26 = vcvt.s32.f32 %v116_v23 }
  0x6a   :  { %v121_v27 = vand.u32 2147483647, %v120_v25 }
  0x6c   :  { %v124_v29 = vmul.f32 %v123_v26, %v121_v27 }
  0x6e   :  { %v125_v30 = vxor.u32 2147483648, %v124_v29 }
  0x70   :  { %v126_v32 = vsel %vm43_vm7, %v125_v30, %v124_v29 }
  0x71   :  { %v129_v33 = vsel %vm42_vm8, %v374_v14, %v126_v32 }
  0x72   :  { %289 = vcosq.f32 %v129_v33 }
  0x73   :  { %291 = vsinq.f32 %v129_v33 }
  0x7c   :  { %v290_v38 = vpop.eup %289 }
  0x7d   :  { %v292_v39 = vpop.eup %291  ;;  %v141_v40 = vxor.u32 2147483648, %v290_v38 }
  0x7e   :  { %v138_v17 = vxor.u32 2147483648, %v292_v39 }
  0x7f   :  { %v142_v41 = vsel %vm140_vm9, %v141_v40, %v292_v39  ;;  %v245_v42 = vsel %vm243_vm10, %v141_v40, %v292_v39 }
  0x80   :  { %v139_v43 = vsel %vm137_vm11, %v290_v38, %v138_v17  ;;  %v242_v44 = vsel %vm240_vm12, %v290_v38, %v138_v17 }
  0x81   :  { %v143_v45 = vsel %vm136_vm13, %v139_v43, %v142_v41  ;;  %v246_v46 = vsel %vm239_vm14, %v242_v44, %v245_v42 }
  0x82   :  { %v144_v48 = vsel %vm133_vm15, nan, %v143_v45  ;;  %v247_v49 = vsel %vm133_vm15, nan, %v246_v46 }
  0x83   :  { %v248_v50 = vsel %vm40_vm0, %v144_v48, %v247_v49 }
  0x84   :  { %v250_v51 = vadd.f32 %v249_v47, %v248_v50 }
  0x86   :  { %251 = vst [vmem:[#allocation5] sm:$0x3] %v250_v51 }
  0x87   :  { %326 = shalt.err (!%p323_p12)
}
  0x88   :  { %s327_s22 = scalar_lea.hbm %s409_s1, 32 }
  0x89   :  { %p328_p13 = scmp.ne.s32.totalorder %s409_s1, %s327_s22  ;;  %p331_p0 = scmp.lt.u32.totalorder %s327_s22, %s409_s1 }
  0x8b   :  { %p333_p1 = pnand %p331_p0, %p328_p13 }
  0x8d   :  { %336 = shalt.err (!%p333_p1)
}
  0x8e   :  { %261 = dma.vmem_to_hbm [thread:$0]  %s259_s18, 32, %s409_s1, [#allocation4]  }
  0x8f   :  { %339 = dma.done.wait [#allocation4], 32  }
  0x90   :  { %340 = vsyncadd [#allocation4], 4294967264 }
  0x91   :  { %265 = vsyncpa [#allocation3], 1 }
  0x92   :  { %266 = vsyncpa [#allocation4], 1 }

</bundles_post_ra>
